<compile_context>
chip_gen: v5e
topology: v5e:2x2
jax: 0.10.0
libtpu: 0.0.40
codegen_flags: <defaults>
</compile_context>

<pallas_src>
import functools

import jax
import jax.numpy as jnp
from jax import lax
from jax.experimental import pallas as pl
from jax.experimental.pallas import tpu as pltpu


VMEM_LIMIT = 32 * 1024 * 1024  # explicit scoped-VMEM budget, safe on v5e/v6e/v7x


def _pick_tile(dim, pref, multiple):
    """Largest tile <= pref that is a multiple of `multiple` and divides dim."""
    pref = min(pref, dim)
    cand = (pref // multiple) * multiple
    while cand >= multiple:
        if dim % cand == 0:
            return cand
        cand -= multiple
    return dim  # fall back to the full dimension (always legal)


# ---------------------------------------------------------------------------
# Tiled projection matmul (bf16 inputs, f32 accumulation)
# ---------------------------------------------------------------------------

def _matmul_kernel(x_ref, w_ref, o_ref, acc_ref):
    @pl.when(pl.program_id(2) == 0)
    def _():
        acc_ref[...] = jnp.zeros_like(acc_ref)

    acc_ref[...] += jnp.dot(
        x_ref[...], w_ref[...], preferred_element_type=jnp.float32
    )

    @pl.when(pl.program_id(2) == pl.num_programs(2) - 1)
    def _():
        o_ref[...] = acc_ref[...].astype(o_ref.dtype)


def matmul_pallas(x, w, out_dtype=None, *, tm=256, tn=256, tk=512):
    M, K = x.shape
    K2, N = w.shape
    assert K == K2
    out_dtype = out_dtype or x.dtype

    tm = _pick_tile(M, tm, 8)
    tn = _pick_tile(N, tn, 128)
    tk = _pick_tile(K, tk, 128)

    x_bytes = jnp.dtype(x.dtype).itemsize
    w_bytes = jnp.dtype(w.dtype).itemsize
    o_bytes = jnp.dtype(out_dtype).itemsize

    return pl.pallas_call(
        _matmul_kernel,
        out_shape=jax.ShapeDtypeStruct((M, N), out_dtype),
        grid_spec=pltpu.PrefetchScalarGridSpec(
            num_scalar_prefetch=0,
            grid=(M // tm, N // tn, K // tk),
            in_specs=[
                pl.BlockSpec((tm, tk), lambda i, j, k: (i, k)),
                pl.BlockSpec((tk, tn), lambda i, j, k: (k, j)),
            ],
            out_specs=pl.BlockSpec((tm, tn), lambda i, j, k: (i, j)),
            scratch_shapes=[pltpu.VMEM((tm, tn), jnp.float32)],
        ),
        compiler_params=pltpu.CompilerParams(
            dimension_semantics=("parallel", "parallel", "arbitrary"),
            vmem_limit_bytes=VMEM_LIMIT,
        ),
        cost_estimate=pl.CostEstimate(
            flops=2 * M * N * K,
            transcendentals=0,
            bytes_accessed=M * K * x_bytes + K * N * w_bytes + M * N * o_bytes,
        ),
    )(x, w)


# ---------------------------------------------------------------------------
# RoPE kernel (applied once per tensor; not repeated per query head)
# ---------------------------------------------------------------------------

def _rope_kernel(x_ref, cos_ref, sin_ref, o_ref, *, scale):
    # x_ref: (tq, n_heads, head_dim); cos/sin: (tq, head_dim // 2)
    x = x_ref[...].astype(jnp.float32)
    half = x.shape[-1] // 2
    c = cos_ref[...].astype(jnp.float32)[:, None, :] * scale  # (tq, 1, half)
    s = sin_ref[...].astype(jnp.float32)[:, None, :] * scale
    x1 = x[:, :, :half]
    x2 = x[:, :, half:]
    # NeoX rotate-half without materializing a concatenate: two partial stores.
    o_ref[:, :, :half] = (x1 * c - x2 * s).astype(o_ref.dtype)
    o_ref[:, :, half:] = (x2 * c + x1 * s).astype(o_ref.dtype)


def rope_pallas(x, cos, sin, scale, *, tq=256):
    """x: [S, n, head_dim], cos/sin: [S, head_dim//2] -> [S, n, head_dim]."""
    S, n, hd = x.shape
    half = hd // 2
    tq = _pick_tile(S, tq, 8)
    kernel = functools.partial(_rope_kernel, scale=float(scale))
    return pl.pallas_call(
        kernel,
        out_shape=jax.ShapeDtypeStruct((S, n, hd), x.dtype),
        grid=(S // tq,),
        in_specs=[
            pl.BlockSpec((tq, n, hd), lambda i: (i, 0, 0)),
            pl.BlockSpec((tq, half), lambda i: (i, 0)),
            pl.BlockSpec((tq, half), lambda i: (i, 0)),
        ],
        out_specs=pl.BlockSpec((tq, n, hd), lambda i: (i, 0, 0)),
        compiler_params=pltpu.CompilerParams(
            dimension_semantics=("parallel",),
            vmem_limit_bytes=VMEM_LIMIT,
        ),
    )(x, cos, sin)


# ---------------------------------------------------------------------------
# Flash-style causal attention with GQA (online softmax, causal tile skipping)
# ---------------------------------------------------------------------------

def _flash_attn_kernel(q_ref, k_ref, v_ref, o_ref, m_ref, l_ref, acc_ref):
    qi = pl.program_id(1)
    ki = pl.program_id(2)
    tq = q_ref.shape[0]
    tkv = k_ref.shape[0]

    @pl.when(ki == 0)
    def _():
        m_ref[...] = jnp.full(m_ref.shape, -1e30, dtype=m_ref.dtype)
        l_ref[...] = jnp.zeros(l_ref.shape, dtype=l_ref.dtype)
        acc_ref[...] = jnp.zeros(acc_ref.shape, dtype=acc_ref.dtype)

    q_start = qi * tq
    k_start = ki * tkv
    # Skip KV tiles that are entirely above the causal diagonal.
    should_run = k_start <= q_start + (tq - 1)

    @pl.when(should_run)
    def _():
        q = q_ref[...]
        k = k_ref[...]
        # (tq, tkv) = q @ k^T on the MXU, f32 accumulation.
        s = lax.dot_general(
            q, k, (((1,), (1,)), ((), ())), preferred_element_type=jnp.float32
        )
        row = q_start + lax.broadcasted_iota(jnp.int32, (tq, tkv), 0)
        col = k_start + lax.broadcasted_iota(jnp.int32, (tq, tkv), 1)
        s = jnp.where(col <= row, s, jnp.float32(-1e30))

        m_prev = m_ref[...]
        m_new = jnp.maximum(m_prev, jnp.max(s, axis=-1, keepdims=True))
        alpha = jnp.exp(m_prev - m_new)
        p = jnp.exp(s - m_new)
        l_ref[...] = alpha * l_ref[...] + jnp.sum(p, axis=-1, keepdims=True)
        acc_ref[...] = alpha * acc_ref[...] + jnp.dot(
            p.astype(v_ref.dtype), v_ref[...], preferred_element_type=jnp.float32
        )
        m_ref[...] = m_new

    @pl.when(ki == pl.num_programs(2) - 1)
    def _():
        inv_l = pl.reciprocal(l_ref[...], approx=True)
        o_ref[...] = (acc_ref[...] * inv_l).astype(o_ref.dtype)


def flash_attention_pallas(q, k, v, num_heads, num_kv_heads, head_dim,
                           *, tq=128, tkv=128):
    """q: [S, nh*hd], k/v: [S, nkv*hd] (RoPE already applied) -> [S, nh*hd]."""
    S = q.shape[0]
    group = num_heads // num_kv_heads
    # Head slicing via column BlockSpecs needs lane-aligned heads. For real
    # Llama head_dim is 128; smaller head dims would need a head-major layout.
    assert head_dim % 128 == 0, "head_dim must be a multiple of 128 for this layout"
    tq = _pick_tile(S, tq, 8)
    tkv = _pick_tile(S, tkv, 8)

    elem = jnp.dtype(q.dtype).itemsize
    return pl.pallas_call(
        _flash_attn_kernel,
        out_shape=jax.ShapeDtypeStruct((S, num_heads * head_dim), q.dtype),
        grid_spec=pltpu.PrefetchScalarGridSpec(
            num_scalar_prefetch=0,
            grid=(num_heads, S // tq, S // tkv),
            in_specs=[
                pl.BlockSpec((tq, head_dim), lambda h, qi, ki: (qi, h)),
                pl.BlockSpec((tkv, head_dim), lambda h, qi, ki: (ki, h // group)),
                pl.BlockSpec((tkv, head_dim), lambda h, qi, ki: (ki, h // group)),
            ],
            out_specs=pl.BlockSpec((tq, head_dim), lambda h, qi, ki: (qi, h)),
            scratch_shapes=[
                pltpu.VMEM((tq, 1), jnp.float32),        # running max m
                pltpu.VMEM((tq, 1), jnp.float32),        # running sum l
                pltpu.VMEM((tq, head_dim), jnp.float32),  # output accumulator
            ],
        ),
        compiler_params=pltpu.CompilerParams(
            dimension_semantics=("parallel", "parallel", "arbitrary"),
            vmem_limit_bytes=VMEM_LIMIT,
        ),
        cost_estimate=pl.CostEstimate(
            flops=4 * num_heads * S * S * head_dim,          # QK^T + PV
            transcendentals=num_heads * S * S,               # exp
            bytes_accessed=(q.size + k.size + v.size + q.size) * elem,
        ),
    )(q, k, v)


# ---------------------------------------------------------------------------
# LlamaAttention forward (glue in plain JAX, hot paths in Pallas)
# ---------------------------------------------------------------------------

def make_rope_tables(positions, head_dim, base=10000.0):
    # GPT-NeoX style, half-width tables (duplication handled inside the kernel).
    half = head_dim // 2
    inv_freq = 1.0 / (base ** (jnp.arange(0, half, dtype=jnp.float32) / half))
    freqs = positions.astype(jnp.float32)[:, None] * inv_freq[None, :]  # [S, half]
    return jnp.cos(freqs), jnp.sin(freqs)


def llama_attention_forward(positions, hidden_states, w_qkv, w_o,
                            num_heads, num_kv_heads):
    S, H = hidden_states.shape
    head_dim = H // num_heads
    q_size = num_heads * head_dim
    kv_size = num_kv_heads * head_dim
    scaling = float(head_dim) ** -0.5

    # bf16 on the MXU, f32 accumulation inside the kernels.
    x_bf16 = hidden_states.astype(jnp.bfloat16)
    w_qkv_bf16 = w_qkv.astype(jnp.bfloat16)
    w_o_bf16 = w_o.astype(jnp.bfloat16)

    # qkv_proj (ColumnParallelLinear, no bias) — tiled, accumulated matmul.
    qkv = matmul_pallas(x_bf16, w_qkv_bf16, out_dtype=jnp.bfloat16)  # [S, q+2kv]
    q = qkv[:, :q_size]
    k = qkv[:, q_size:q_size + kv_size]
    v = qkv[:, q_size + kv_size:]

    # RoPE applied once to Q and once to K (no per-query-head re-rotation).
    cos, sin = make_rope_tables(positions, head_dim)  # [S, head_dim//2]
    q = rope_pallas(q.reshape(S, num_heads, head_dim), cos, sin, scaling)
    k = rope_pallas(k.reshape(S, num_kv_heads, head_dim), cos, sin, 1.0)
    q = q.reshape(S, q_size)   # free reshapes; layout stays [S, n*hd]
    k = k.reshape(S, kv_size)

    # PagedAttentionWithRoPE -> prefill causal flash attention with GQA.
    # TODO(synk): paged KV-cache read/write and cache_event (decode path) are
    # not modeled; this computes prefill attention over the provided tokens.
    attn = flash_attention_pallas(q, k, v, num_heads, num_kv_heads, head_dim)

    # o_proj (RowParallelLinear, no bias).
    out = matmul_pallas(attn, w_o_bf16, out_dtype=hidden_states.dtype)  # [S, H]
    return out


# ---------------------------------------------------------------------------
# Main
# ---------------------------------------------------------------------------

if __name__ == "__main__":
    # Small but representative shapes: head_dim = 128 (as in real Llama) keeps
    # all BlockSpec column slices lane-aligned.
    hidden_size = 256
    num_heads = 2
    num_kv_heads = 1          # GQA group = 2
    head_dim = hidden_size // num_heads   # 128
    seq_len = 256             # 2 q-tiles x 2 kv-tiles -> exercises causal skip

    key = jax.random.PRNGKey(0)
    k_x, k_qkv, k_o = jax.random.split(key, 3)

    hidden_states = jax.random.normal(k_x, (seq_len, hidden_size), jnp.float32)
    positions = jnp.arange(seq_len, dtype=jnp.int32)

    qkv_out = (num_heads + 2 * num_kv_heads) * head_dim
    # Weights stored as [in, out] so the kernels do x @ W directly.
    w_qkv = jax.random.normal(k_qkv, (hidden_size, qkv_out), jnp.float32) * 0.05
    w_o = jax.random.normal(k_o, (num_heads * head_dim, hidden_size), jnp.float32) * 0.05

    out = llama_attention_forward(
        positions, hidden_states, w_qkv, w_o, num_heads, num_kv_heads
    )
    jax.block_until_ready(out)
    assert out.shape == (seq_len, hidden_size)
    assert bool(jnp.isfinite(out).all())
    print("KERNEL_OK")
</pallas_src>

<mosaic_0001>
module attributes {stable_mosaic.version = 11 : i64} {
  func.func @_matmul_kernel(%arg0: i32, %arg1: i32, %arg2: i32, %arg3: memref<256x256xbf16, #tpu.memory_space<vmem>>, %arg4: memref<256x256xbf16, #tpu.memory_space<vmem>>, %arg5: memref<256x256xbf16, #tpu.memory_space<vmem>>, %arg6: memref<256x256xf32, #tpu.memory_space<vmem>>) attributes {dimension_semantics = [#tpu.dimension_semantics<parallel>, #tpu.dimension_semantics<parallel>, #tpu.dimension_semantics<arbitrary>], iteration_bounds = array<i64: 1, 2, 1>, scalar_prefetch = 0 : i64, scratch_operands = 1 : i64, tpu.core_type = #tpu.core_type<tc>, window_params = [{transform_indices = @transform_0, window_bounds = array<i64: 256, 256>}, {transform_indices = @transform_1, window_bounds = array<i64: 256, 256>}, {transform_indices = @transform_2, window_bounds = array<i64: 256, 256>}]} {
    %c0_i32 = arith.constant 0 : i32
    %0 = arith.cmpi eq, %arg2, %c0_i32 : i32
    %1 = arith.extui %0 : i1 to i32
    %c0_i32_0 = arith.constant 0 : i32
    %2 = arith.cmpi ne, %1, %c0_i32_0 : i32
    scf.if %2 {
      %cst_10 = arith.constant 0.000000e+00 : f32
      %12 = vector.broadcast %cst_10 : f32 to vector<256x256xf32>
      %c0_11 = arith.constant 0 : index
      %c0_12 = arith.constant 0 : index
      %13 = vector.load %arg6[%c0_11, %c0_12] : memref<256x256xf32, #tpu.memory_space<vmem>>, vector<256x256xf32>
      tpu.vector_store %arg6[%c0_11, %c0_12], %12 {strides = array<i32>} : memref<256x256xf32, #tpu.memory_space<vmem>>, vector<256x256xf32>,
    } else {
    }
    %c0 = arith.constant 0 : index
    %c0_1 = arith.constant 0 : index
    %3 = vector.load %arg6[%c0, %c0_1] : memref<256x256xf32, #tpu.memory_space<vmem>>, vector<256x256xf32>
    %c0_2 = arith.constant 0 : index
    %c0_3 = arith.constant 0 : index
    %4 = vector.load %arg3[%c0_2, %c0_3] : memref<256x256xbf16, #tpu.memory_space<vmem>>, vector<256x256xbf16>
    %c0_4 = arith.constant 0 : index
    %c0_5 = arith.constant 0 : index
    %5 = vector.load %arg4[%c0_4, %c0_5] : memref<256x256xbf16, #tpu.memory_space<vmem>>, vector<256x256xbf16>
    %cst = arith.constant dense<0.000000e+00> : vector<256x256xf32>
    %6 = tpu.matmul %4, %5, %cst {dimension_numbers = #tpu.dot_dimension_numbers<[1], [0], [0], [1], [0, 0, 1, 1], [], []>} : vector<256x256xbf16>, vector<256x256xbf16>, vector<256x256xf32> -> vector<256x256xf32>
    %7 = arith.addf %3, %6 : vector<256x256xf32>
    %c0_6 = arith.constant 0 : index
    %c0_7 = arith.constant 0 : index
    %8 = vector.load %arg6[%c0_6, %c0_7] : memref<256x256xf32, #tpu.memory_space<vmem>>, vector<256x256xf32>
    tpu.vector_store %arg6[%c0_6, %c0_7], %7 {strides = array<i32>} : memref<256x256xf32, #tpu.memory_space<vmem>>, vector<256x256xf32>,
    %c0_i32_8 = arith.constant 0 : i32
    %9 = arith.cmpi eq, %arg2, %c0_i32_8 : i32
    %10 = arith.extui %9 : i1 to i32
    %c0_i32_9 = arith.constant 0 : i32
    %11 = arith.cmpi ne, %10, %c0_i32_9 : i32
    scf.if %11 {
      %c0_10 = arith.constant 0 : index
      %c0_11 = arith.constant 0 : index
      %12 = vector.load %arg6[%c0_10, %c0_11] : memref<256x256xf32, #tpu.memory_space<vmem>>, vector<256x256xf32>
      %13 = arith.truncf %12 : vector<256x256xf32> to vector<256x256xbf16>
      %c0_12 = arith.constant 0 : index
      %c0_13 = arith.constant 0 : index
      %14 = vector.load %arg5[%c0_12, %c0_13] : memref<256x256xbf16, #tpu.memory_space<vmem>>, vector<256x256xbf16>
      tpu.vector_store %arg5[%c0_12, %c0_13], %13 {strides = array<i32>} : memref<256x256xbf16, #tpu.memory_space<vmem>>, vector<256x256xbf16>,
    } else {
    }
    return
  }
  func.func @transform_0(%arg0: i32, %arg1: i32, %arg2: i32) -> (i32, i32) {
    %c0_i32 = arith.constant 0 : i32
    return %arg0, %arg2 : i32, i32
  }
  func.func @transform_1(%arg0: i32, %arg1: i32, %arg2: i32) -> (i32, i32) {
    %c0_i32 = arith.constant 0 : i32
    return %arg2, %arg1 : i32, i32
  }
  func.func @transform_2(%arg0: i32, %arg1: i32, %arg2: i32) -> (i32, i32) {
    %c0_i32 = arith.constant 0 : i32
    return %arg0, %arg1 : i32, i32
  }
}

</mosaic_0001>

<bundles_post_ra>
// kernel: tpu_custom_call.1
= control target key start
LH: loop header
LB: loop body
LE: loop exit
PB: predicated region body
PF: predicated region fallthrough
CT: control target
= control target key end

     0   :  { %7 = vsyncpa [#allocation4], 0  ;;  %s2330_s0 = inlined_call_operand.hbm [shape: bf16[256,256], index: 0, kind: input, shape index: {}]   ;;  %s2331_s1 = inlined_call_operand.hbm [shape: bf16[256,512], index: 1, kind: input, shape index: {}]   ;;  %s2332_s2 = inlined_call_operand.hbm [shape: bf16[256,512], index: 2, kind: output, shape index: {}]  }
   0x1   :  { %8 = vsyncpa [#allocation7], 0 }
   0x2   :  { %10 = vsyncpa [#allocation7 + $0x1], 0 }
   0x3   :  { %11 = vsyncpa [#allocation5], 0 }
   0x4   :  { %13 = vsyncpa [#allocation5 + $0x1], 0  ;;  %s2071_s9 = smov 0   ;;  %s2073_s10 = smov 0  }
   0x5   :  { %s2075_s11 = smov 0   ;;  %s2077_s12 = smov 0  }
   0x6   :  { %s2079_s13 = smov 0   ;;  %s2081_s14 = smov 0  }
   0x7 LB: > { %s1483_s15 = sadd.s32 4294967295, %s2047_s14   ;;  %s1484_s16 = sadd.s32 4294967294, %s2047_s14   ;;  %s2047_s14 = sphi %s2081_s14, %s19_s14   ;;  %s2043_s13 = sphi %s2079_s13, %s2346_s13   ;;  %s2039_s12 = sphi %s2077_s12, %s2345_s12   ;;  %s2035_s11 = sphi %s2075_s11, %s2344_s11   ;;  %s2031_s10 = sphi %s2073_s10, %s2343_s10   ;;  %s2027_s9 = sphi %s2071_s9, %s2342_s9  }
   0x8   : > { %p88_p0 = scmp.ne.s32.totalorder %s2031_s10, %s2027_s9  ;;  %p2105_p1 = scmp.eq.s32.totalorder %s1483_s15, 0 }
   0x9   : > { %p2109_p2 = scmp.eq.s32.totalorder %s1483_s15, 1  ;;  %p120_p3 = scmp.eq.s32.totalorder %s1484_s16, 1 }
   0xa   : > { %p2115_p4 = por %p2105_p1, %p88_p0  ;;  %p1485_p5 = scmp.ge.s32.totalorder %s2047_s14, 1 }
   0xb   : > { %p2120_p6 = por %p120_p3, %p88_p0  ;;  %p127_p7 = scmp.lt.s32.totalorder %s2047_s14, 3 }
   0xc   : > { %s144_s23 = sshll.u32 %s2330_s0, 4  ;;  %s2049_s25 = smov [#allocation3]   ;;  %s145_s23 = int_to_ptr.hbm [resolvable:$true] %s144_s23 }
   0xd   : > { %p2128_p8 = pnand %p1485_p5, %p127_p7  ;;  %s146_s26 = sshll.u32 %s2049_s25, 4  ;;  %s147_s26 = int_to_ptr.vmem [resolvable:$true] %s146_s26 }
   0xe   : > { %p1487_p11 = scmp.ge.s32.totalorder %s2047_s14, 2  ;;  %s2333_s27 = smov 128  }
   0xf   : > { %p1830_p9 = pneg %p2128_p8  ;;  %s2051_s28 = smov 8  }
  0x10   : > { %s34_s29 = sadd.s32 1, %s2043_s13  ;;  %s75_s30 = sadd.s32 1, %s2035_s11 }
  0x11   : > { %p1831_p10 = pnand %p1830_p9, %p2105_p1  ;;  %p36_p12 = scmp.ge.s32.totalorder %s34_s29, 2 }
  0x12   : > { %p82_p13 = scmp.ne.s32.totalorder %s2035_s11, %s2031_s10  ;;  %p83_p0 = scmp.eq.s32.totalorder %s2047_s14, 0 }
  0x13   : > { %1833 = dma.hbm_to_vmem [thread:$0]  (!%p1831_p10), %s145_s23, 4096, %s147_s26, [#allocation4], %s2333_s27, %s2333_s27, %s2051_s28  }
  0x14   : > { %s2348_s29 = smov (%p36_p12, %s34_s29), 0  ;;  %p2147_p3 = por %p83_p0, %p82_p13 }
  0x15   : > { %p2153_p5 = por %p2109_p2, %p82_p13  ;;  %s71_s5 = ssub.s32 %s2043_s13, %s2348_s29 }
  0x16   : > { %p1843_p7 = scmp.lt.s32.totalorder %s2047_s14, 2  ;;  %p73_p9 = scmp.eq.s32.totalorder %s71_s5, 0 }
  0x17   : > { %s160_s6 = sand.u32 1, %s2035_s11   ;;  %s1756_s15 = sshll.u32 %s2043_s13, 3 }
  0x18   : > { %s1488_s7 = sshll.u32 %s160_s6, 8  ;;  %s172_s22 = scalar_lea.hbm %s2331_s1, %s1756_s15 }
  0x19   : > { %s2162_s8 = scalar_select %p73_p9, %s2035_s11, %s75_s30  }
  0x1a   : > { %s164_s23 = scalar_lea.vmem [#allocation6], %s1488_s7  ;;  %s173_s18 = sshll.u32 %s172_s22, 4  ;;  %s174_s18 = int_to_ptr.hbm [resolvable:$true] %s173_s18 }
  0x1b   : > { %s175_s25 = sshll.u32 %s164_s23, 4  ;;  %p1835_p2 = pnand %p1843_p7, %p2147_p3  ;;  %s176_s25 = int_to_ptr.vmem [resolvable:$true] %s175_s25 }
  0x1c   : > { %s161_s26 = scalar_lea.sflag [#allocation7], %s160_s6  ;;  %s2052_s27 = smov 256  }
  0x1d   : > { %s2341_s5 = smov 128   ;;  %187 = sbr.rel (%p2128_p8) target bundleno = 465 (0x1d1), region = 28 }
  0x1e   : > { %1837 = dma.hbm_to_vmem [thread:$0]  (!%p1835_p2), %s174_s18, 4096, %s176_s25, %s161_s26, %s2052_s27, %s2341_s5, %s2051_s28  }
  0x22   : > { %2014 = dma.done.wait (%p2105_p1), [#allocation4], 4096  }
  0x23   : > { %2016 = vsyncadd (%p2105_p1), [#allocation4], 4294963200  ;;  %s2179_s30 = sand.u32 1, %s2031_s10  }
  0x24   : > { %s1493_s3 = sshll.u32 %s2179_s30, 8  ;;  %s195_s6 = scalar_lea.sflag [#allocation7], %s2179_s30 }
  0x25   : > { %s2185_s27 = scalar_lea.vmem [#allocation6], %s1493_s3 }
  0x26   : > { %2018 = dma.done.wait (%p2115_p4), %s195_s6, 4096  }
  0x27   : > { %2020 = vsyncadd (%p2115_p4), %s195_s6, 4294963200  ;;  %v1681_v0 = vld [vmem:[%s2185_s27 + $0x70] sm:$0xf]  ;;  %v1804_v1 = vld [vmem:[%s2185_s27 + $0x74] sm:$0xf0]  ;;  %s2257_s17 = scalar_lea.vmem [#allocation8], %s1493_s3 }
  0x28   : > { %v1745_v2 = vld [vmem:[%s2185_s27 + $0xf0] sm:$0xf]  ;;  %v1682_v3 = vor.u32 %v1804_v1, %v1681_v0  ;;  %v1820_v4 = vld [vmem:[%s2185_s27 + $0xf4] sm:$0xf0]  ;;  %v1803_v5 = vld [vmem:[%s2185_s27 + $0x74] sm:$0xf] }
  0x29   : > { %v1683_v6 = vld [vmem:[%s2185_s27 + $0x78] sm:$0xf0]  ;;  %v1746_v7 = vor.u32 %v1820_v4, %v1745_v2  ;;  %v1819_v9 = vld [vmem:[%s2185_s27 + $0xf4] sm:$0xf]  ;;  %v1673_v11 = vld [vmem:[%s2185_s27 + $0x60] sm:$0xf] }
  0x2a   : > { %v1686_v8 = vor.u32 %v1803_v5, %v1683_v6  ;;  %v1747_v10 = vld [vmem:[%s2185_s27 + $0xf8] sm:$0xf0]  ;;  %742 = vmatpush.bf16.msra.mxu0 %v1682_v3  ;;  %v1802_v13 = vld [vmem:[%s2185_s27 + $0x64] sm:$0xf0]  ;;  %v1737_v14 = vld [vmem:[%s2185_s27 + $0xe0] sm:$0xf] }
  0x2b   : > { %v1750_v12 = vor.u32 %v1819_v9, %v1747_v10  ;;  %v1818_v15 = vld [vmem:[%s2185_s27 + $0xe4] sm:$0xf0]  ;;  %831 = vmatpush.bf16.msra.mxu1 %v1746_v7  ;;  %v1674_v16 = vor.u32 %v1802_v13, %v1673_v11  ;;  %v1801_v18 = vld [vmem:[%s2185_s27 + $0x64] sm:$0xf]  ;;  %v1675_v19 = vld [vmem:[%s2185_s27 + $0x68] sm:$0xf0] }
  0x2c   : > { %920 = vmatpush.bf16.msra.mxu2 %v1686_v8  ;;  %v1738_v17 = vor.u32 %v1818_v15, %v1737_v14  ;;  %v1817_v20 = vld [vmem:[%s2185_s27 + $0xe4] sm:$0xf]  ;;  %v1678_v21 = vor.u32 %v1801_v18, %v1675_v19  ;;  %v1739_v22 = vld [vmem:[%s2185_s27 + $0xe8] sm:$0xf0]  ;;  %v1665_v23 = vld [vmem:[%s2185_s27 + $0x50] sm:$0xf] }
  0x2d   : > { %1009 = vmatpush.bf16.msra.mxu3 %v1750_v12  ;;  %v1800_v24 = vld [vmem:[%s2185_s27 + $0x54] sm:$0xf0]  ;;  %v1742_v25 = vor.u32 %v1817_v20, %v1739_v22  ;;  %v1729_v26 = vld [vmem:[%s2185_s27 + $0xd0] sm:$0xf]  ;;  %v1799_v28 = vld [vmem:[%s2185_s27 + $0x54] sm:$0xf] }
  0x2e   : > { %v1816_v27 = vld [vmem:[%s2185_s27 + $0xd4] sm:$0xf0]  ;;  %743 = vmatpush.bf16.msra.mxu0 %v1674_v16  ;;  %v1666_v29 = vor.u32 %v1800_v24, %v1665_v23  ;;  %v1667_v30 = vld [vmem:[%s2185_s27 + $0x58] sm:$0xf0]  ;;  %v1815_v31 = vld [vmem:[%s2185_s27 + $0xd4] sm:$0xf] }
  0x2f   : > { %v1731_v32 = vld [vmem:[%s2185_s27 + $0xd8] sm:$0xf0]  ;;  %832 = vmatpush.bf16.msra.mxu1 %v1738_v17  ;;  %v1730_v33 = vor.u32 %v1816_v27, %v1729_v26  ;;  %v1670_v34 = vor.u32 %v1799_v28, %v1667_v30  ;;  %v1657_v35 = vld [vmem:[%s2185_s27 + $0x40] sm:$0xf]  ;;  %v1798_v36 = vld [vmem:[%s2185_s27 + $0x44] sm:$0xf0] }
  0x30   : > { %921 = vmatpush.bf16.msra.mxu2 %v1678_v21  ;;  %v1721_v37 = vld [vmem:[%s2185_s27 + $0xc0] sm:$0xf]  ;;  %v1734_v38 = vor.u32 %v1815_v31, %v1731_v32  ;;  %v1814_v39 = vld [vmem:[%s2185_s27 + $0xc4] sm:$0xf0]  ;;  %v1797_v40 = vld [vmem:[%s2185_s27 + $0x44] sm:$0xf]  ;;  %v1658_v44 = vor.u32 %v1798_v36, %v1657_v35 }
  0x31   : > { %1010 = vmatpush.bf16.msra.mxu3 %v1742_v25  ;;  %v1659_v41 = vld [vmem:[%s2185_s27 + $0x48] sm:$0xf0]  ;;  %v1813_v42 = vld [vmem:[%s2185_s27 + $0xc4] sm:$0xf]  ;;  %v1722_v45 = vor.u32 %v1814_v39, %v1721_v37  ;;  %v1649_v47 = vld [vmem:[%s2185_s27 + $0x30] sm:$0xf] }
  0x32   : > { %v1723_v43 = vld [vmem:[%s2185_s27 + $0xc8] sm:$0xf0]  ;;  %744 = vmatpush.bf16.msra.mxu0 %v1666_v29  ;;  %v1662_v46 = vor.u32 %v1797_v40, %v1659_v41  ;;  %v1796_v48 = vld [vmem:[%s2185_s27 + $0x34] sm:$0xf0]  ;;  %v1713_v49 = vld [vmem:[%s2185_s27 + $0xb0] sm:$0xf] }
  0x33   : > { %833 = vmatpush.bf16.msra.mxu1 %v1730_v33  ;;  %v1726_v50 = vor.u32 %v1813_v42, %v1723_v43  ;;  %v1812_v51 = vld [vmem:[%s2185_s27 + $0xb4] sm:$0xf0]  ;;  %v1795_v52 = vld [vmem:[%s2185_s27 + $0x34] sm:$0xf]  ;;  %v1651_v53 = vld [vmem:[%s2185_s27 + $0x38] sm:$0xf0]  ;;  %v1650_v56 = vor.u32 %v1796_v48, %v1649_v47 }
  0x34   : > { %922 = vmatpush.bf16.msra.mxu2 %v1670_v34  ;;  %v1811_v54 = vld [vmem:[%s2185_s27 + $0xb4] sm:$0xf]  ;;  %v1715_v55 = vld [vmem:[%s2185_s27 + $0xb8] sm:$0xf0]  ;;  %v1714_v57 = vor.u32 %v1812_v51, %v1713_v49  ;;  %v1654_v58 = vor.u32 %v1795_v52, %v1651_v53  ;;  %v1641_v59 = vld [vmem:[%s2185_s27 + $0x20] sm:$0xf] }
  0x35   : > { %1011 = vmatpush.bf16.msra.mxu3 %v1734_v38  ;;  %v1794_v60 = vld [vmem:[%s2185_s27 + $0x24] sm:$0xf0]  ;;  %v1705_v61 = vld [vmem:[%s2185_s27 + $0xa0] sm:$0xf]  ;;  %v1718_v62 = vor.u32 %v1811_v54, %v1715_v55  ;;  %v1793_v0 = vld [vmem:[%s2185_s27 + $0x24] sm:$0xf] }
  0x36   : > { %745 = vmatpush.bf16.msra.mxu0 %v1658_v44  ;;  %v1810_v63 = vld [vmem:[%s2185_s27 + $0xa4] sm:$0xf0]  ;;  %v1643_v1 = vld [vmem:[%s2185_s27 + $0x28] sm:$0xf0]  ;;  %v1809_v2 = vld [vmem:[%s2185_s27 + $0xa4] sm:$0xf]  ;;  %v1642_v4 = vor.u32 %v1794_v60, %v1641_v59 }
  0x37   : > { %834 = vmatpush.bf16.msra.mxu1 %v1722_v45  ;;  %v1707_v3 = vld [vmem:[%s2185_s27 + $0xa8] sm:$0xf0]  ;;  %v1706_v5 = vor.u32 %v1810_v63, %v1705_v61  ;;  %v1646_v6 = vor.u32 %v1793_v0, %v1643_v1  ;;  %v1633_v7 = vld [vmem:[%s2185_s27 + $0x10] sm:$0xf]  ;;  %v1792_v8 = vld [vmem:[%s2185_s27 + $0x14] sm:$0xf0] }
  0x38   : > { %923 = vmatpush.bf16.msra.mxu2 %v1662_v46  ;;  %v1697_v9 = vld [vmem:[%s2185_s27 + $0x90] sm:$0xf]  ;;  %v1710_v10 = vor.u32 %v1809_v2, %v1707_v3  ;;  %v1808_v11 = vld [vmem:[%s2185_s27 + $0x94] sm:$0xf0]  ;;  %v1791_v12 = vld [vmem:[%s2185_s27 + $0x14] sm:$0xf]  ;;  %v1634_v16 = vor.u32 %v1792_v8, %v1633_v7 }
  0x39   : > { %1012 = vmatpush.bf16.msra.mxu3 %v1726_v50  ;;  %v1635_v13 = vld [vmem:[%s2185_s27 + $0x18] sm:$0xf0]  ;;  %v1807_v14 = vld [vmem:[%s2185_s27 + $0x94] sm:$0xf]  ;;  %v1698_v17 = vor.u32 %v1808_v11, %v1697_v9  ;;  %v1625_v19 = vld [vmem:[%s2185_s27] sm:$0xf] }
  0x3a   : > { %746 = vmatpush.bf16.msra.mxu0 %v1650_v56  ;;  %v1699_v15 = vld [vmem:[%s2185_s27 + $0x98] sm:$0xf0]  ;;  %v1638_v18 = vor.u32 %v1791_v12, %v1635_v13  ;;  %v1790_v20 = vld [vmem:[%s2185_s27 + $0x4] sm:$0xf0]  ;;  %v1689_v21 = vld [vmem:[%s2185_s27 + $0x80] sm:$0xf] }
  0x3b   : > { %835 = vmatpush.bf16.msra.mxu1 %v1714_v57  ;;  %v1702_v22 = vor.u32 %v1807_v14, %v1699_v15  ;;  %v1806_v23 = vld [vmem:[%s2185_s27 + $0x84] sm:$0xf0]  ;;  %v1789_v24 = vld [vmem:[%s2185_s27 + $0x4] sm:$0xf]  ;;  %v1627_v25 = vld [vmem:[%s2185_s27 + $0x8] sm:$0xf0]  ;;  %v1626_v28 = vor.u32 %v1790_v20, %v1625_v19 }
  0x3c   : > { %924 = vmatpush.bf16.msra.mxu2 %v1654_v58  ;;  %v1805_v26 = vld [vmem:[%s2185_s27 + $0x84] sm:$0xf]  ;;  %v1691_v27 = vld [vmem:[%s2185_s27 + $0x88] sm:$0xf0]  ;;  %v1497_v29 = vld [vmem:[#allocation3] sm:$0xf]  ;;  %v1690_v31 = vor.u32 %v1806_v23, %v1689_v21  ;;  %v1630_v32 = vor.u32 %v1789_v24, %v1627_v25 }
  0x3d   : > { %1013 = vmatpush.bf16.msra.mxu3 %v1718_v62  ;;  %v1758_v30 = vld [vmem:[#allocation3 + $0x4] sm:$0xf0]  ;;  %v1757_v33 = vld [vmem:[#allocation3 + $0x4] sm:$0xf]  ;;  %v1499_v34 = vld [vmem:[#allocation3 + $0x8] sm:$0xf0]  ;;  %v1694_v35 = vor.u32 %v1805_v26, %v1691_v27 }
  0x3e   : > { %747 = vmatpush.bf16.msra.mxu0 %v1642_v4  ;;  %v1498_v36 = vor.u32 %v1758_v30, %v1497_v29  ;;  %v1502_v37 = vor.u32 %v1757_v33, %v1499_v34  ;;  %v1505_v38 = vld [vmem:[#allocation3 + $0x10] sm:$0xf]  ;;  %v1760_v39 = vld [vmem:[#allocation3 + $0x14] sm:$0xf0]  ;;  %v1759_v40 = vld [vmem:[#allocation3 + $0x14] sm:$0xf] }
  0x3f   : > { %836 = vmatpush.bf16.msra.mxu1 %v1706_v5  ;;  %v1507_v41 = vld [vmem:[#allocation3 + $0x18] sm:$0xf0]  ;;  %v1506_v42 = vor.u32 %v1760_v39, %v1505_v38  ;;  %v1513_v44 = vld [vmem:[#allocation3 + $0x20] sm:$0xf]  ;;  %v1762_v45 = vld [vmem:[#allocation3 + $0x24] sm:$0xf0] }
  0x40   : > { %925 = vmatpush.bf16.msra.mxu2 %v1646_v6  ;;  %v1510_v43 = vor.u32 %v1759_v40, %v1507_v41  ;;  %v1761_v46 = vld [vmem:[#allocation3 + $0x24] sm:$0xf]  ;;  %v1515_v47 = vld [vmem:[#allocation3 + $0x28] sm:$0xf0]  ;;  %v1514_v48 = vor.u32 %v1762_v45, %v1513_v44  ;;  %v1521_v50 = vld [vmem:[#allocation3 + $0x30] sm:$0xf] }
  0x41   : > { %1014 = vmatpush.bf16.msra.mxu3 %v1710_v10  ;;  %v1518_v49 = vor.u32 %v1761_v46, %v1515_v47  ;;  %v1764_v51 = vld [vmem:[#allocation3 + $0x34] sm:$0xf0]  ;;  %v1763_v52 = vld [vmem:[#allocation3 + $0x34] sm:$0xf]  ;;  %v1523_v53 = vld [vmem:[#allocation3 + $0x38] sm:$0xf0] }
  0x42   : > { %748 = vmatpush.bf16.msra.mxu0 %v1634_v16  ;;  %v1522_v54 = vor.u32 %v1764_v51, %v1521_v50  ;;  %v1526_v55 = vor.u32 %v1763_v52, %v1523_v53  ;;  %v1529_v56 = vld [vmem:[#allocation3 + $0x40] sm:$0xf]  ;;  %v1766_v57 = vld [vmem:[#allocation3 + $0x44] sm:$0xf0]  ;;  %v1765_v58 = vld [vmem:[#allocation3 + $0x44] sm:$0xf] }
  0x43   : > { %837 = vmatpush.bf16.msra.mxu1 %v1698_v17  ;;  %v1531_v59 = vld [vmem:[#allocation3 + $0x48] sm:$0xf0]  ;;  %v1530_v60 = vor.u32 %v1766_v57, %v1529_v56  ;;  %v1537_v62 = vld [vmem:[#allocation3 + $0x50] sm:$0xf]  ;;  %v1768_v63 = vld [vmem:[#allocation3 + $0x54] sm:$0xf0] }
  0x44   : > { %926 = vmatpush.bf16.msra.mxu2 %v1638_v18  ;;  %v1534_v61 = vor.u32 %v1765_v58, %v1531_v59  ;;  %v1767_v0 = vld [vmem:[#allocation3 + $0x54] sm:$0xf]  ;;  %v1539_v1 = vld [vmem:[#allocation3 + $0x58] sm:$0xf0]  ;;  %v1538_v2 = vor.u32 %v1768_v63, %v1537_v62  ;;  %v1545_v4 = vld [vmem:[#allocation3 + $0x60] sm:$0xf] }
  0x45   : > { %1015 = vmatpush.bf16.msra.mxu3 %v1702_v22  ;;  %v1542_v3 = vor.u32 %v1767_v0, %v1539_v1  ;;  %v1770_v5 = vld [vmem:[#allocation3 + $0x64] sm:$0xf0]  ;;  %v1769_v6 = vld [vmem:[#allocation3 + $0x64] sm:$0xf]  ;;  %v1547_v7 = vld [vmem:[#allocation3 + $0x68] sm:$0xf0] }
  0x46   : > { %749 = vmatpush.bf16.msra.mxu0 %v1626_v28  ;;  %v1546_v8 = vor.u32 %v1770_v5, %v1545_v4  ;;  %v1550_v9 = vor.u32 %v1769_v6, %v1547_v7  ;;  %v1553_v10 = vld [vmem:[#allocation3 + $0x70] sm:$0xf]  ;;  %v1772_v11 = vld [vmem:[#allocation3 + $0x74] sm:$0xf0]  ;;  %v1771_v12 = vld [vmem:[#allocation3 + $0x74] sm:$0xf] }
  0x47   : > { %838 = vmatpush.bf16.msra.mxu1 %v1690_v31  ;;  %v1555_v13 = vld [vmem:[#allocation3 + $0x78] sm:$0xf0]  ;;  %v1554_v14 = vor.u32 %v1772_v11, %v1553_v10  ;;  %v1561_v16 = vld [vmem:[#allocation3 + $0x80] sm:$0xf]  ;;  %v1774_v17 = vld [vmem:[#allocation3 + $0x84] sm:$0xf0] }
  0x48   : > { %927 = vmatpush.bf16.msra.mxu2 %v1630_v32  ;;  %v1558_v15 = vor.u32 %v1771_v12, %v1555_v13  ;;  %v1773_v18 = vld [vmem:[#allocation3 + $0x84] sm:$0xf]  ;;  %v1563_v19 = vld [vmem:[#allocation3 + $0x88] sm:$0xf0]  ;;  %v1562_v20 = vor.u32 %v1774_v17, %v1561_v16  ;;  %v1569_v31 = vld [vmem:[#allocation3 + $0x90] sm:$0xf] }
  0x49   : > { %1016 = vmatpush.bf16.msra.mxu3 %v1694_v35  ;;  %750 = vmatmul.bf16.vlgmr.msra.gmra.mxu0 %v1498_v36  ;;  %v1566_v22 = vor.u32 %v1773_v18, %v1563_v19  ;;  %v1776_v32 = vld [vmem:[#allocation3 + $0x94] sm:$0xf0]  ;;  %v1775_v33 = vld [vmem:[#allocation3 + $0x94] sm:$0xf]  ;;  %v1571_v34 = vld [vmem:[#allocation3 + $0x98] sm:$0xf0] }
  0x4a   : > { %839 = vmatmul.bf16.vlgmr.msra.gmra.mxu1 %v1502_v37  ;;  %v1574_v39 = vor.u32 %v1775_v33, %v1571_v34  ;;  %v1577_v51 = vld [vmem:[#allocation3 + $0xa0] sm:$0xf]  ;;  %v1778_v52 = vld [vmem:[#allocation3 + $0xa4] sm:$0xf0]  ;;  %v1777_v53 = vld [vmem:[#allocation3 + $0xa4] sm:$0xf] }
  0x4b   : > { %928 = vmatmul.bf16.vlgmr.msra.gmra.mxu2 %v1498_v36  ;;  %v1570_v36 = vor.u32 %v1776_v32, %v1569_v31  ;;  %v1578_v56 = vor.u32 %v1778_v52, %v1577_v51  ;;  %v1585_v7 = vld [vmem:[#allocation3 + $0xb0] sm:$0xf]  ;;  %v1587_v10 = vld [vmem:[#allocation3 + $0xb8] sm:$0xf0]  ;;  %s1821_s19 = sshll.u32 %s2039_s12, 3  ;;  %s1373_s15 = sshll.u32 %s2257_s17, 4  ;;  %s1374_s15 = int_to_ptr.vmem [resolvable:$true] %s1373_s15 }
  0x4c   : > { %1017 = vmatmul.bf16.vlgmr.msra.gmra.mxu3 %v1502_v37  ;;  %s1372_s7 = scalar_lea.hbm %s2332_s2, %s1821_s19  ;;  %s1358_s12 = scalar_lea.sflag [#allocation5], %s2179_s30 }
  0x4d   : > { %s1375_s16 = sshll.u32 %s1372_s7, 4  ;;  %s1981_s18 = scalar_lea.hbm %s2332_s2, 512  ;;  %s1376_s16 = int_to_ptr.hbm [resolvable:$true] %s1375_s16 }
  0x4e   : > { %s1975_s21 = sshra.s32 %s1376_s16, 4  ;;  %s1976_s21 = int_to_ptr.hbm [resolvable:$true] %s1975_s21 }
  0x4f   : > { %s1977_s22 = scalar_lea.hbm %s1976_s21, 256  ;;  %p1982_p10 = scmp.lt.s32.totalorder %s1976_s21, %s2332_s2 }
  0x50   : > { %p1978_p1 = scmp.ne.s32.totalorder %s1976_s21, %s1977_s22  ;;  %p1983_p12 = scmp.lt.s32.totalorder %s1981_s18, %s1977_s22 }
  0x52   : > { %p1979_p4 = pnand %p1978_p1, %p2153_p5  ;;  %p1984_p13 = por %p1983_p12, %p1982_p10 }
  0x54   : > { %p1980_p8 = pneg %p1979_p4 }
  0x56   : > { %p1985_p0 = pnand %p1984_p13, %p1980_p8 }
  0x59   : > { %755 = vmatmul.bf16.gmra.mxu0 %v1506_v42 }
  0x5a   : > { %844 = vmatmul.bf16.gmra.mxu1 %v1510_v43 }
  0x5b   : > { %933 = vmatmul.bf16.gmra.mxu2 %v1506_v42 }
  0x5c   : > { %1022 = vmatmul.bf16.gmra.mxu3 %v1510_v43 }
  0x69   : > { %760 = vmatmul.bf16.gmra.mxu0 %v1514_v48 }
  0x6a   : > { %849 = vmatmul.bf16.gmra.mxu1 %v1518_v49 }
  0x6b   : > { %938 = vmatmul.bf16.gmra.mxu2 %v1514_v48 }
  0x6c   : > { %1027 = vmatmul.bf16.gmra.mxu3 %v1518_v49 }
  0x79   : > { %765 = vmatmul.bf16.gmra.mxu0 %v1522_v54 }
  0x7a   : > { %854 = vmatmul.bf16.gmra.mxu1 %v1526_v55 }
  0x7b   : > { %943 = vmatmul.bf16.gmra.mxu2 %v1522_v54  ;;  %v1579_v54 = vld [vmem:[#allocation3 + $0xa8] sm:$0xf0] }
  0x7c   : > { %1032 = vmatmul.bf16.gmra.mxu3 %v1526_v55  ;;  %v1582_v59 = vor.u32 %v1777_v53, %v1579_v54 }
  0x89   : > { %770 = vmatmul.bf16.gmra.mxu0 %v1530_v60 }
  0x8a   : > { %859 = vmatmul.bf16.gmra.mxu1 %v1534_v61 }
  0x8b   : > { %948 = vmatmul.bf16.gmra.mxu2 %v1530_v60 }
  0x8c   : > { %1037 = vmatmul.bf16.gmra.mxu3 %v1534_v61 }
  0x99   : > { %775 = vmatmul.bf16.gmra.mxu0 %v1538_v2 }
  0x9a   : > { %864 = vmatmul.bf16.gmra.mxu1 %v1542_v3 }
  0x9b   : > { %953 = vmatmul.bf16.gmra.mxu2 %v1538_v2 }
  0x9c   : > { %1042 = vmatmul.bf16.gmra.mxu3 %v1542_v3 }
  0xa9   : > { %780 = vmatmul.bf16.gmra.mxu0 %v1546_v8 }
  0xaa   : > { %869 = vmatmul.bf16.gmra.mxu1 %v1550_v9 }
  0xab   : > { %958 = vmatmul.bf16.gmra.mxu2 %v1546_v8  ;;  %v1780_v8 = vld [vmem:[#allocation3 + $0xb4] sm:$0xf0] }
  0xac   : > { %1047 = vmatmul.bf16.gmra.mxu3 %v1550_v9  ;;  %v1779_v9 = vld [vmem:[#allocation3 + $0xb4] sm:$0xf]  ;;  %v1586_v12 = vor.u32 %v1780_v8, %v1585_v7 }
  0xb9   : > { %785 = vmatmul.bf16.gmra.mxu0 %v1554_v14 }
  0xba   : > { %874 = vmatmul.bf16.gmra.mxu1 %v1558_v15 }
  0xbb   : > { %963 = vmatmul.bf16.gmra.mxu2 %v1554_v14 }
  0xbc   : > { %1052 = vmatmul.bf16.gmra.mxu3 %v1558_v15  ;;  %v1590_v15 = vor.u32 %v1779_v9, %v1587_v10 }
  0xc6   : > { %v751_v21 = vpop.f32.mrf.mxu0 }
  0xc7   : > { %v840_v23 = vpop.f32.mrf.mxu1 }
  0xc8   : > { %v841_v24 = vadd.f32 %v840_v23, %v751_v21 }
  0xc9   : > { %790 = vmatmul.bf16.gmra.mxu0 %v1562_v20 }
  0xca   : > { %879 = vmatmul.bf16.gmra.mxu1 %v1566_v22 }
  0xcb   : > { %968 = vmatmul.bf16.gmra.mxu2 %v1562_v20 }
  0xcc   : > { %1057 = vmatmul.bf16.gmra.mxu3 %v1566_v22 }
  0xce   : > { %v929_v25 = vpop.f32.mrf.mxu2  ;;  %v753_v27 = vpop.f32.mrf.mxu0 }
  0xcf   : > { %v1018_v26 = vpop.f32.mrf.mxu3  ;;  %v842_v29 = vpop.f32.mrf.mxu1 }
  0xd0   : > { %v1019_v28 = vadd.f32 %v1018_v26, %v929_v25  ;;  %v843_v40 = vadd.f32 %v842_v29, %v753_v27  ;;  %v1593_v27 = vld [vmem:[#allocation3 + $0xc0] sm:$0xf]  ;;  %v1781_v29 = vld [vmem:[#allocation3 + $0xc4] sm:$0xf] }
  0xd2   : > { %v1293_v30 = vpack.c.bf16 %v1019_v28, %v841_v24  ;;  %v1782_v28 = vld [vmem:[#allocation3 + $0xc4] sm:$0xf0] }
  0xd3   : > { %v1594_v32 = vor.u32 %v1782_v28, %v1593_v27 }
  0xd4   : > { %1325 = vst [vmem:[%s2257_s17] sm:$0xff] %v1293_v30  ;;  %v1595_v30 = vld [vmem:[#allocation3 + $0xc8] sm:$0xf0] }
  0xd6   : > { %v931_v35 = vpop.f32.mrf.mxu2  ;;  %v756_v38 = vpop.f32.mrf.mxu0 }
  0xd7   : > { %v1020_v37 = vpop.f32.mrf.mxu3  ;;  %v845_v42 = vpop.f32.mrf.mxu1 }
  0xd8   : > { %v1021_v41 = vadd.f32 %v1020_v37, %v931_v35  ;;  %v846_v44 = vadd.f32 %v845_v42, %v756_v38  ;;  %v1598_v35 = vor.u32 %v1781_v29, %v1595_v30 }
  0xd9   : > { %795 = vmatmul.bf16.gmra.mxu0 %v1570_v36 }
  0xda   : > { %v1294_v43 = vpack.c.bf16 %v1021_v41, %v843_v40  ;;  %884 = vmatmul.bf16.gmra.mxu1 %v1574_v39 }
  0xdb   : > { %973 = vmatmul.bf16.gmra.mxu2 %v1570_v36 }
  0xdc   : > { %1326 = vst [vmem:[%s2257_s17 + $0x8] sm:$0xff] %v1294_v43  ;;  %1062 = vmatmul.bf16.gmra.mxu3 %v1574_v39 }
  0xde   : > { %v934_v45 = vpop.f32.mrf.mxu2  ;;  %v758_v47 = vpop.f32.mrf.mxu0 }
  0xdf   : > { %v1023_v46 = vpop.f32.mrf.mxu3  ;;  %v847_v49 = vpop.f32.mrf.mxu1 }
  0xe0   : > { %v1024_v48 = vadd.f32 %v1023_v46, %v934_v45  ;;  %v848_v60 = vadd.f32 %v847_v49, %v758_v47  ;;  %v1601_v47 = vld [vmem:[#allocation3 + $0xd0] sm:$0xf]  ;;  %v1783_v49 = vld [vmem:[#allocation3 + $0xd4] sm:$0xf] }
  0xe2   : > { %v1295_v50 = vpack.c.bf16 %v1024_v48, %v846_v44  ;;  %v1784_v48 = vld [vmem:[#allocation3 + $0xd4] sm:$0xf0] }
  0xe3   : > { %v1602_v52 = vor.u32 %v1784_v48, %v1601_v47 }
  0xe4   : > { %1327 = vst [vmem:[%s2257_s17 + $0x10] sm:$0xff] %v1295_v50  ;;  %v1603_v50 = vld [vmem:[#allocation3 + $0xd8] sm:$0xf0] }
  0xe6   : > { %v936_v55 = vpop.f32.mrf.mxu2  ;;  %v761_v58 = vpop.f32.mrf.mxu0 }
  0xe7   : > { %v1025_v57 = vpop.f32.mrf.mxu3  ;;  %v850_v62 = vpop.f32.mrf.mxu1 }
  0xe8   : > { %v1026_v61 = vadd.f32 %v1025_v57, %v936_v55  ;;  %v851_v0 = vadd.f32 %v850_v62, %v761_v58  ;;  %v1606_v55 = vor.u32 %v1783_v49, %v1603_v50 }
  0xe9   : > { %800 = vmatmul.bf16.gmra.mxu0 %v1578_v56 }
  0xea   : > { %v1296_v63 = vpack.c.bf16 %v1026_v61, %v848_v60  ;;  %889 = vmatmul.bf16.gmra.mxu1 %v1582_v59 }
  0xeb   : > { %978 = vmatmul.bf16.gmra.mxu2 %v1578_v56 }
  0xec   : > { %1328 = vst [vmem:[%s2257_s17 + $0x18] sm:$0xff] %v1296_v63  ;;  %1067 = vmatmul.bf16.gmra.mxu3 %v1582_v59 }
  0xee   : > { %v939_v1 = vpop.f32.mrf.mxu2  ;;  %v763_v3 = vpop.f32.mrf.mxu0 }
  0xef   : > { %v1028_v2 = vpop.f32.mrf.mxu3  ;;  %v852_v5 = vpop.f32.mrf.mxu1 }
  0xf0   : > { %v1029_v4 = vadd.f32 %v1028_v2, %v939_v1  ;;  %v853_v16 = vadd.f32 %v852_v5, %v763_v3  ;;  %v1609_v3 = vld [vmem:[#allocation3 + $0xe0] sm:$0xf]  ;;  %v1785_v5 = vld [vmem:[#allocation3 + $0xe4] sm:$0xf] }
  0xf2   : > { %v1297_v6 = vpack.c.bf16 %v1029_v4, %v851_v0  ;;  %v1786_v4 = vld [vmem:[#allocation3 + $0xe4] sm:$0xf0] }
  0xf3   : > { %v1610_v8 = vor.u32 %v1786_v4, %v1609_v3 }
  0xf4   : > { %1329 = vst [vmem:[%s2257_s17 + $0x20] sm:$0xff] %v1297_v6  ;;  %v1611_v6 = vld [vmem:[#allocation3 + $0xe8] sm:$0xf0] }
  0xf6   : > { %v941_v11 = vpop.f32.mrf.mxu2  ;;  %v766_v14 = vpop.f32.mrf.mxu0 }
  0xf7   : > { %v1030_v13 = vpop.f32.mrf.mxu3  ;;  %v855_v18 = vpop.f32.mrf.mxu1 }
  0xf8   : > { %v1031_v17 = vadd.f32 %v1030_v13, %v941_v11  ;;  %v856_v20 = vadd.f32 %v855_v18, %v766_v14  ;;  %v1614_v11 = vor.u32 %v1785_v5, %v1611_v6 }
  0xf9   : > { %805 = vmatmul.bf16.gmra.mxu0 %v1586_v12 }
  0xfa   : > { %v1298_v19 = vpack.c.bf16 %v1031_v17, %v853_v16  ;;  %894 = vmatmul.bf16.gmra.mxu1 %v1590_v15 }
  0xfb   : > { %983 = vmatmul.bf16.gmra.mxu2 %v1586_v12 }
  0xfc   : > { %1330 = vst [vmem:[%s2257_s17 + $0x28] sm:$0xff] %v1298_v19  ;;  %1072 = vmatmul.bf16.gmra.mxu3 %v1590_v15 }
  0xfe   : > { %v944_v21 = vpop.f32.mrf.mxu2  ;;  %v768_v23 = vpop.f32.mrf.mxu0 }
  0xff   : > { %v1033_v22 = vpop.f32.mrf.mxu3  ;;  %v857_v25 = vpop.f32.mrf.mxu1 }
 0x100   : > { %v1034_v24 = vadd.f32 %v1033_v22, %v944_v21  ;;  %v858_v36 = vadd.f32 %v857_v25, %v768_v23  ;;  %v1617_v23 = vld [vmem:[#allocation3 + $0xf0] sm:$0xf]  ;;  %v1787_v25 = vld [vmem:[#allocation3 + $0xf4] sm:$0xf] }
 0x102   : > { %v1299_v26 = vpack.c.bf16 %v1034_v24, %v856_v20  ;;  %v1788_v24 = vld [vmem:[#allocation3 + $0xf4] sm:$0xf0] }
 0x103   : > { %v1618_v28 = vor.u32 %v1788_v24, %v1617_v23 }
 0x104   : > { %1331 = vst [vmem:[%s2257_s17 + $0x30] sm:$0xff] %v1299_v26  ;;  %v1619_v26 = vld [vmem:[#allocation3 + $0xf8] sm:$0xf0] }
 0x106   : > { %v946_v31 = vpop.f32.mrf.mxu2  ;;  %v771_v34 = vpop.f32.mrf.mxu0 }
 0x107   : > { %v1035_v33 = vpop.f32.mrf.mxu3  ;;  %v860_v38 = vpop.f32.mrf.mxu1 }
 0x108   : > { %v1036_v37 = vadd.f32 %v1035_v33, %v946_v31  ;;  %v861_v40 = vadd.f32 %v860_v38, %v771_v34  ;;  %v1622_v31 = vor.u32 %v1787_v25, %v1619_v26 }
 0x109   : > { %810 = vmatmul.bf16.gmra.mxu0 %v1594_v32 }
 0x10a   : > { %v1300_v39 = vpack.c.bf16 %v1036_v37, %v858_v36  ;;  %899 = vmatmul.bf16.gmra.mxu1 %v1598_v35 }
 0x10b   : > { %988 = vmatmul.bf16.gmra.mxu2 %v1594_v32 }
 0x10c   : > { %1332 = vst [vmem:[%s2257_s17 + $0x38] sm:$0xff] %v1300_v39  ;;  %1077 = vmatmul.bf16.gmra.mxu3 %v1598_v35 }
 0x10e   : > { %v949_v41 = vpop.f32.mrf.mxu2  ;;  %v773_v43 = vpop.f32.mrf.mxu0 }
 0x10f   : > { %v1038_v42 = vpop.f32.mrf.mxu3  ;;  %v862_v45 = vpop.f32.mrf.mxu1 }
 0x110   : > { %v1039_v44 = vadd.f32 %v1038_v42, %v949_v41  ;;  %v863_v56 = vadd.f32 %v862_v45, %v773_v43 }
 0x112   : > { %v1301_v46 = vpack.c.bf16 %v1039_v44, %v861_v40 }
 0x114   : > { %1333 = vst [vmem:[%s2257_s17 + $0x40] sm:$0xff] %v1301_v46 }
 0x116   : > { %v951_v51 = vpop.f32.mrf.mxu2  ;;  %v776_v54 = vpop.f32.mrf.mxu0 }
 0x117   : > { %v1040_v53 = vpop.f32.mrf.mxu3  ;;  %v865_v58 = vpop.f32.mrf.mxu1 }
 0x118   : > { %v1041_v57 = vadd.f32 %v1040_v53, %v951_v51  ;;  %v866_v60 = vadd.f32 %v865_v58, %v776_v54 }
 0x119   : > { %815 = vmatmul.bf16.gmra.mxu0 %v1602_v52 }
 0x11a   : > { %v1302_v59 = vpack.c.bf16 %v1041_v57, %v863_v56  ;;  %904 = vmatmul.bf16.gmra.mxu1 %v1606_v55 }
 0x11b   : > { %993 = vmatmul.bf16.gmra.mxu2 %v1602_v52 }
 0x11c   : > { %1334 = vst [vmem:[%s2257_s17 + $0x48] sm:$0xff] %v1302_v59  ;;  %1082 = vmatmul.bf16.gmra.mxu3 %v1606_v55 }
 0x11e   : > { %v954_v61 = vpop.f32.mrf.mxu2  ;;  %v778_v63 = vpop.f32.mrf.mxu0 }
 0x11f   : > { %v1043_v62 = vpop.f32.mrf.mxu3  ;;  %v867_v1 = vpop.f32.mrf.mxu1 }
 0x120   : > { %v1044_v0 = vadd.f32 %v1043_v62, %v954_v61  ;;  %v868_v12 = vadd.f32 %v867_v1, %v778_v63 }
 0x122   : > { %v1303_v2 = vpack.c.bf16 %v1044_v0, %v866_v60 }
 0x124   : > { %1335 = vst [vmem:[%s2257_s17 + $0x50] sm:$0xff] %v1303_v2 }
 0x126   : > { %v956_v7 = vpop.f32.mrf.mxu2  ;;  %v781_v10 = vpop.f32.mrf.mxu0 }
 0x127   : > { %v1045_v9 = vpop.f32.mrf.mxu3  ;;  %v870_v14 = vpop.f32.mrf.mxu1 }
 0x128   : > { %v1046_v13 = vadd.f32 %v1045_v9, %v956_v7  ;;  %v871_v16 = vadd.f32 %v870_v14, %v781_v10 }
 0x129   : > { %820 = vmatmul.bf16.gmra.mxu0 %v1610_v8 }
 0x12a   : > { %v1304_v15 = vpack.c.bf16 %v1046_v13, %v868_v12  ;;  %909 = vmatmul.bf16.gmra.mxu1 %v1614_v11 }
 0x12b   : > { %998 = vmatmul.bf16.gmra.mxu2 %v1610_v8 }
 0x12c   : > { %1336 = vst [vmem:[%s2257_s17 + $0x58] sm:$0xff] %v1304_v15  ;;  %1087 = vmatmul.bf16.gmra.mxu3 %v1614_v11 }
 0x12e   : > { %v959_v17 = vpop.f32.mrf.mxu2  ;;  %v783_v19 = vpop.f32.mrf.mxu0 }
 0x12f   : > { %v1048_v18 = vpop.f32.mrf.mxu3  ;;  %v872_v21 = vpop.f32.mrf.mxu1 }
 0x130   : > { %v1049_v20 = vadd.f32 %v1048_v18, %v959_v17  ;;  %v873_v32 = vadd.f32 %v872_v21, %v783_v19 }
 0x132   : > { %v1305_v22 = vpack.c.bf16 %v1049_v20, %v871_v16 }
 0x134   : > { %1337 = vst [vmem:[%s2257_s17 + $0x60] sm:$0xff] %v1305_v22 }
 0x136   : > { %v961_v27 = vpop.f32.mrf.mxu2  ;;  %v786_v30 = vpop.f32.mrf.mxu0 }
 0x137   : > { %v1050_v29 = vpop.f32.mrf.mxu3  ;;  %v875_v34 = vpop.f32.mrf.mxu1 }
 0x138   : > { %v1051_v33 = vadd.f32 %v1050_v29, %v961_v27  ;;  %v876_v36 = vadd.f32 %v875_v34, %v786_v30 }
 0x139   : > { %825 = vmatmul.bf16.gmra.mxu0 %v1618_v28 }
 0x13a   : > { %v1306_v35 = vpack.c.bf16 %v1051_v33, %v873_v32  ;;  %914 = vmatmul.bf16.gmra.mxu1 %v1622_v31 }
 0x13b   : > { %1003 = vmatmul.bf16.gmra.mxu2 %v1618_v28 }
 0x13c   : > { %1338 = vst [vmem:[%s2257_s17 + $0x68] sm:$0xff] %v1306_v35  ;;  %1092 = vmatmul.bf16.gmra.mxu3 %v1622_v31 }
 0x13e   : > { %v964_v37 = vpop.f32.mrf.mxu2  ;;  %v788_v39 = vpop.f32.mrf.mxu0 }
 0x13f   : > { %v1053_v38 = vpop.f32.mrf.mxu3  ;;  %v877_v41 = vpop.f32.mrf.mxu1 }
 0x140   : > { %v1054_v40 = vadd.f32 %v1053_v38, %v964_v37  ;;  %v878_v46 = vadd.f32 %v877_v41, %v788_v39 }
 0x142   : > { %v1307_v42 = vpack.c.bf16 %v1054_v40, %v876_v36 }
 0x144   : > { %1339 = vst [vmem:[%s2257_s17 + $0x70] sm:$0xff] %v1307_v42 }
 0x146   : > { %v966_v43 = vpop.f32.mrf.mxu2  ;;  %v791_v45 = vpop.f32.mrf.mxu0 }
 0x147   : > { %v1055_v44 = vpop.f32.mrf.mxu3  ;;  %v880_v48 = vpop.f32.mrf.mxu1 }
 0x148   : > { %v1056_v47 = vadd.f32 %v1055_v44, %v966_v43  ;;  %v881_v50 = vadd.f32 %v880_v48, %v791_v45 }
 0x14a   : > { %v1308_v49 = vpack.c.bf16 %v1056_v47, %v878_v46 }
 0x14c   : > { %1340 = vst [vmem:[%s2257_s17 + $0x78] sm:$0xff] %v1308_v49 }
 0x14e   : > { %v969_v51 = vpop.f32.mrf.mxu2  ;;  %v793_v53 = vpop.f32.mrf.mxu0 }
 0x14f   : > { %v1058_v52 = vpop.f32.mrf.mxu3  ;;  %v882_v55 = vpop.f32.mrf.mxu1 }
 0x150   : > { %v1059_v54 = vadd.f32 %v1058_v52, %v969_v51  ;;  %v883_v60 = vadd.f32 %v882_v55, %v793_v53 }
 0x152   : > { %v1309_v56 = vpack.c.bf16 %v1059_v54, %v881_v50 }
 0x154   : > { %1341 = vst [vmem:[%s2257_s17 + $0x80] sm:$0xff] %v1309_v56 }
 0x156   : > { %v971_v57 = vpop.f32.mrf.mxu2  ;;  %v796_v59 = vpop.f32.mrf.mxu0 }
 0x157   : > { %v1060_v58 = vpop.f32.mrf.mxu3  ;;  %v885_v62 = vpop.f32.mrf.mxu1 }
 0x158   : > { %v1061_v61 = vadd.f32 %v1060_v58, %v971_v57  ;;  %v886_v0 = vadd.f32 %v885_v62, %v796_v59 }
 0x15a   : > { %v1310_v63 = vpack.c.bf16 %v1061_v61, %v883_v60 }
 0x15c   : > { %1342 = vst [vmem:[%s2257_s17 + $0x88] sm:$0xff] %v1310_v63 }
 0x15e   : > { %v974_v1 = vpop.f32.mrf.mxu2  ;;  %v798_v3 = vpop.f32.mrf.mxu0 }
 0x15f   : > { %v1063_v2 = vpop.f32.mrf.mxu3  ;;  %v887_v5 = vpop.f32.mrf.mxu1 }
 0x160   : > { %v1064_v4 = vadd.f32 %v1063_v2, %v974_v1  ;;  %v888_v10 = vadd.f32 %v887_v5, %v798_v3 }
 0x162   : > { %v1311_v6 = vpack.c.bf16 %v1064_v4, %v886_v0 }
 0x164   : > { %1343 = vst [vmem:[%s2257_s17 + $0x90] sm:$0xff] %v1311_v6 }
 0x166   : > { %v976_v7 = vpop.f32.mrf.mxu2  ;;  %v801_v9 = vpop.f32.mrf.mxu0 }
 0x167   : > { %v1065_v8 = vpop.f32.mrf.mxu3  ;;  %v890_v12 = vpop.f32.mrf.mxu1 }
 0x168   : > { %v1066_v11 = vadd.f32 %v1065_v8, %v976_v7  ;;  %v891_v14 = vadd.f32 %v890_v12, %v801_v9 }
 0x16a   : > { %v1312_v13 = vpack.c.bf16 %v1066_v11, %v888_v10 }
 0x16c   : > { %1344 = vst [vmem:[%s2257_s17 + $0x98] sm:$0xff] %v1312_v13 }
 0x16e   : > { %v979_v15 = vpop.f32.mrf.mxu2  ;;  %v803_v17 = vpop.f32.mrf.mxu0 }
 0x16f   : > { %v1068_v16 = vpop.f32.mrf.mxu3  ;;  %v892_v19 = vpop.f32.mrf.mxu1 }
 0x170   : > { %v1069_v18 = vadd.f32 %v1068_v16, %v979_v15  ;;  %v893_v24 = vadd.f32 %v892_v19, %v803_v17 }
 0x172   : > { %v1313_v20 = vpack.c.bf16 %v1069_v18, %v891_v14 }
 0x174   : > { %1345 = vst [vmem:[%s2257_s17 + $0xa0] sm:$0xff] %v1313_v20 }
 0x176   : > { %v981_v21 = vpop.f32.mrf.mxu2  ;;  %v806_v23 = vpop.f32.mrf.mxu0 }
 0x177   : > { %v1070_v22 = vpop.f32.mrf.mxu3  ;;  %v895_v26 = vpop.f32.mrf.mxu1 }
 0x178   : > { %v1071_v25 = vadd.f32 %v1070_v22, %v981_v21  ;;  %v896_v28 = vadd.f32 %v895_v26, %v806_v23 }
 0x17a   : > { %v1314_v27 = vpack.c.bf16 %v1071_v25, %v893_v24 }
 0x17c   : > { %1346 = vst [vmem:[%s2257_s17 + $0xa8] sm:$0xff] %v1314_v27 }
 0x17e   : > { %v984_v29 = vpop.f32.mrf.mxu2  ;;  %v808_v31 = vpop.f32.mrf.mxu0 }
 0x17f   : > { %v1073_v30 = vpop.f32.mrf.mxu3  ;;  %v897_v33 = vpop.f32.mrf.mxu1 }
 0x180   : > { %v1074_v32 = vadd.f32 %v1073_v30, %v984_v29  ;;  %v898_v38 = vadd.f32 %v897_v33, %v808_v31 }
 0x182   : > { %v1315_v34 = vpack.c.bf16 %v1074_v32, %v896_v28 }
 0x184   : > { %1347 = vst [vmem:[%s2257_s17 + $0xb0] sm:$0xff] %v1315_v34 }
 0x186   : > { %v986_v35 = vpop.f32.mrf.mxu2  ;;  %v811_v37 = vpop.f32.mrf.mxu0 }
 0x187   : > { %v1075_v36 = vpop.f32.mrf.mxu3  ;;  %v900_v40 = vpop.f32.mrf.mxu1 }
 0x188   : > { %v1076_v39 = vadd.f32 %v1075_v36, %v986_v35  ;;  %v901_v42 = vadd.f32 %v900_v40, %v811_v37 }
 0x18a   : > { %v1316_v41 = vpack.c.bf16 %v1076_v39, %v898_v38 }
 0x18c   : > { %1348 = vst [vmem:[%s2257_s17 + $0xb8] sm:$0xff] %v1316_v41 }
 0x18e   : > { %v989_v43 = vpop.f32.mrf.mxu2  ;;  %v813_v45 = vpop.f32.mrf.mxu0 }
 0x18f   : > { %v1078_v44 = vpop.f32.mrf.mxu3  ;;  %v902_v47 = vpop.f32.mrf.mxu1 }
 0x190   : > { %v1079_v46 = vadd.f32 %v1078_v44, %v989_v43  ;;  %v903_v52 = vadd.f32 %v902_v47, %v813_v45 }
 0x192   : > { %v1317_v48 = vpack.c.bf16 %v1079_v46, %v901_v42 }
 0x194   : > { %1349 = vst [vmem:[%s2257_s17 + $0xc0] sm:$0xff] %v1317_v48 }
 0x196   : > { %v991_v49 = vpop.f32.mrf.mxu2  ;;  %v816_v51 = vpop.f32.mrf.mxu0 }
 0x197   : > { %v1080_v50 = vpop.f32.mrf.mxu3  ;;  %v905_v54 = vpop.f32.mrf.mxu1 }
 0x198   : > { %v1081_v53 = vadd.f32 %v1080_v50, %v991_v49  ;;  %v906_v56 = vadd.f32 %v905_v54, %v816_v51 }
 0x19a   : > { %v1318_v55 = vpack.c.bf16 %v1081_v53, %v903_v52 }
 0x19c   : > { %1350 = vst [vmem:[%s2257_s17 + $0xc8] sm:$0xff] %v1318_v55 }
 0x19e   : > { %v994_v57 = vpop.f32.mrf.mxu2  ;;  %v818_v59 = vpop.f32.mrf.mxu0 }
 0x19f   : > { %v1083_v58 = vpop.f32.mrf.mxu3  ;;  %v907_v61 = vpop.f32.mrf.mxu1 }
 0x1a0   : > { %v1084_v60 = vadd.f32 %v1083_v58, %v994_v57  ;;  %v908_v2 = vadd.f32 %v907_v61, %v818_v59 }
 0x1a2   : > { %v1319_v62 = vpack.c.bf16 %v1084_v60, %v906_v56 }
 0x1a4   : > { %1351 = vst [vmem:[%s2257_s17 + $0xd0] sm:$0xff] %v1319_v62 }
 0x1a6   : > { %v996_v63 = vpop.f32.mrf.mxu2  ;;  %v821_v1 = vpop.f32.mrf.mxu0 }
 0x1a7   : > { %v1085_v0 = vpop.f32.mrf.mxu3  ;;  %v910_v4 = vpop.f32.mrf.mxu1 }
 0x1a8   : > { %v1086_v3 = vadd.f32 %v1085_v0, %v996_v63  ;;  %v911_v6 = vadd.f32 %v910_v4, %v821_v1 }
 0x1aa   : > { %v1320_v5 = vpack.c.bf16 %v1086_v3, %v908_v2 }
 0x1ac   : > { %1352 = vst [vmem:[%s2257_s17 + $0xd8] sm:$0xff] %v1320_v5 }
 0x1ae   : > { %v999_v7 = vpop.f32.mrf.mxu2  ;;  %v823_v10 = vpop.f32.mrf.mxu0 }
 0x1af   : > { %v1088_v8 = vpop.f32.mrf.mxu3  ;;  %v912_v11 = vpop.f32.mrf.mxu1 }
 0x1b0   : > { %v1089_v9 = vadd.f32 %v1088_v8, %v999_v7  ;;  %v913_v15 = vadd.f32 %v912_v11, %v823_v10 }
 0x1b2   : > { %v1321_v12 = vpack.c.bf16 %v1089_v9, %v911_v6 }
 0x1b4   : > { %1353 = vst [vmem:[%s2257_s17 + $0xe0] sm:$0xff] %v1321_v12 }
 0x1b6   : > { %v1001_v13 = vpop.f32.mrf.mxu2  ;;  %v826_v18 = vpop.f32.mrf.mxu0 }
 0x1b7   : > { %v1090_v14 = vpop.f32.mrf.mxu3  ;;  %v915_v19 = vpop.f32.mrf.mxu1 }
 0x1b8   : > { %v1091_v16 = vadd.f32 %v1090_v14, %v1001_v13  ;;  %v916_v20 = vadd.f32 %v915_v19, %v826_v18 }
 0x1ba   : > { %v1322_v17 = vpack.c.bf16 %v1091_v16, %v913_v15 }
 0x1bc   : > { %1354 = vst [vmem:[%s2257_s17 + $0xe8] sm:$0xff] %v1322_v17 }
 0x1be   : > { %v1004_v21 = vpop.f32.mrf.mxu2  ;;  %v828_v25 = vpop.f32.mrf.mxu0 }
 0x1bf   : > { %v1093_v22 = vpop.f32.mrf.mxu3  ;;  %v917_v26 = vpop.f32.mrf.mxu1 }
 0x1c0   : > { %v1094_v23 = vadd.f32 %v1093_v22, %v1004_v21  ;;  %v918_v29 = vadd.f32 %v917_v26, %v828_v25 }
 0x1c2   : > { %v1323_v24 = vpack.c.bf16 %v1094_v23, %v916_v20 }
 0x1c4   : > { %1355 = vst [vmem:[%s2257_s17 + $0xf0] sm:$0xff] %v1323_v24 }
 0x1c6   : > { %v1006_v27 = vpop.f32.mrf.mxu2 }
 0x1c7   : > { %v1095_v28 = vpop.f32.mrf.mxu3 }
 0x1c8   : > { %v1096_v30 = vadd.f32 %v1095_v28, %v1006_v27 }
 0x1ca   : > { %v1324_v31 = vpack.c.bf16 %v1096_v30, %v918_v29 }
 0x1cc   : > { %1356 = vst [vmem:[%s2257_s17 + $0xf8] sm:$0xff] %v1324_v31 }
 0x1cd   : > { %1988 = shalt.err (!%p1985_p0)
}
 0x1ce   : > { %s2053_s30 = smov 128   ;;  %s2054_s3 = smov 256  }
 0x1cf   : > { %s2055_s6 = smov 8  }
 0x1d0   : > { %1828 = dma.vmem_to_hbm [thread:$0]  (%p2153_p5), %s1374_s15, 4096, %s1376_s16, %s1358_s12, %s2053_s30, %s2054_s3, %s2055_s6  }
 0x1d1 PF: > { %s1390_s27 = sand.u32 1, %s2027_s9   ;;  %p1839_p3 = pnand %p1487_p11, %p2120_p6 }
 0x1d2   : > { %s1391_s17 = scalar_lea.sflag [#allocation5], %s1390_s27 }
 0x1d3   : > { %p1840_p7 = pneg %p1839_p3 }
 0x1d5   : > { %2022 = dma.done.wait (%p1840_p7), %s1391_s17, 4096  }
 0x1d6   : > { %2024 = vsyncadd (%p1840_p7), %s1391_s17, 4294963200  ;;  %s19_s14 = sadd.s32 1, %s2047_s14   ;;  %s2342_s9 = smov %s2031_s10 }
 0x1d7   : > { %p16_p9 = scmp.ge.s32.totalorder %s19_s14, 4   ;;  %s2343_s10 = smov %s2035_s11 }
 0x1d8   : > { %s2344_s11 = smov %s2162_s8  ;;  %s2345_s12 = smov %s2043_s13 }
 0x1d9   : > { %s2346_s13 = smov %s2348_s29  ;;  %18 = sbr.rel (!%p16_p9) target bundleno = 7 (0x7), region = 87 }
 0x1de   :  { %1397 = vsyncpa [#allocation4], 1 }
 0x1df   :  { %1399 = vsyncpa [#allocation4 + $0x1], 1 }
 0x1e0   :  { %1400 = vsyncpa [#allocation7], 1 }
 0x1e1   :  { %1402 = vsyncpa [#allocation7 + $0x1], 1 }
 0x1e2   :  { %1403 = vsyncpa [#allocation5], 1 }
 0x1e3   :  { %1405 = vsyncpa [#allocation5 + $0x1], 1 }

</bundles_post_ra>
